<compile_context>
chip_gen: v7x
topology: tpu7x:2x2x1
jax: 0.10.0
libtpu: 0.0.40
codegen_flags: <defaults>
</compile_context>

<pallas_src>
import jax
import jax.numpy as jnp
from jax.experimental import pallas as pl
from jax.experimental.pallas import tpu as pltpu

BN_EPS = 1e-5


def gfa_kernel(x_ref, w_ref, bias_ref, o_ref):
    # x_ref: (Bt, C, N) block; w_ref: (3C, C); bias_ref: (3C, 1)
    bt_blk, C, _ = x_ref.shape
    w = w_ref[...]
    bias = bias_ref[...]
    for i in range(bt_blk):                          # static unroll over batch tile
        x = x_ref[i]                                 # (C, N)

        # One MXU push computes fc_a, fc_b and the (BN+beta)-folded mlp at once.
        abm = jnp.dot(w, x, preferred_element_type=jnp.float32) + bias   # (3C, N)
        a = abm[:C]
        b = abm[C:2 * C]
        m = abm[2 * C:]                              # == beta * BN(mlp(x)), folded

        # att = softmax(a @ b^T, axis=-1): NT dot_general, no explicit transpose
        att = jax.lax.dot_general(
            a, b, dimension_numbers=(((1,), (1,)), ((), ())),
            preferred_element_type=jnp.float32)      # (C, C)
        att = att - jnp.max(att, axis=-1, keepdims=True)
        p = jnp.exp(att)
        # Exact division (small (C, C) tile; approx reciprocal was too lossy).
        att = p / jnp.sum(p, axis=-1, keepdims=True)

        f = jnp.dot(att, m, preferred_element_type=jnp.float32)   # (C, N)
        o_ref[i] = x + f                             # beta already folded into m


def _pick_batch_tile(B):
    # Largest tile that divides B while keeping at least 2 grid steps: the
    # parallel batch axis is the only cross-TensorCore parallelism (v7x: 2 TCs).
    for cand in range(max(B // 2, 1), 0, -1):
        if B % cand == 0:
            return cand
    return 1


def gfa_forward(feature, params, *, batch_tile=None):
    """feature: (B, C, N, 1) float32 (NCHW with W==1)."""
    B, C, N, W = feature.shape
    assert W == 1
    x = feature[..., 0]                              # (B, C, N)

    # ---- host-side parameter folds (O(C^2) work, done once) ----
    s = params["gamma"] * jax.lax.rsqrt(params["var"] + BN_EPS)      # (C, 1)
    wm_f = s * params["wm"]                                          # (C, C)
    bm_f = params["beta_bn"] - s * params["mean"]                    # (C, 1)
    beta = params["beta"][0, 0]
    w_stacked = jnp.concatenate(
        [params["wa"], params["wb"], beta * wm_f], axis=0)           # (3C, C)
    b_stacked = jnp.concatenate(
        [params["ba"], params["bb"], beta * bm_f], axis=0)           # (3C, 1)

    bt = _pick_batch_tile(B) if batch_tile is None else batch_tile
    assert B % bt == 0

    out = pl.pallas_call(
        gfa_kernel,
        out_shape=jax.ShapeDtypeStruct((B, C, N), jnp.float32),
        grid_spec=pltpu.PrefetchScalarGridSpec(
            num_scalar_prefetch=0,
            grid=(B // bt,),
            in_specs=[
                pl.BlockSpec((bt, C, N), lambda i: (i, 0, 0)),   # x
                pl.BlockSpec((3 * C, C), lambda i: (0, 0)),      # stacked weights
                pl.BlockSpec((3 * C, 1), lambda i: (0, 0)),      # stacked biases
            ],
            out_specs=pl.BlockSpec((bt, C, N), lambda i: (i, 0, 0)),
        ),
        compiler_params=pltpu.CompilerParams(
            dimension_semantics=("parallel",)),
    )(x, w_stacked, b_stacked)
    return out[..., None]                            # back to (B, C, N, 1)


def gfa_reference(feature, params):
    x = feature[..., 0]                              # (B, C, N)
    a = jnp.einsum("oc,bcn->bon", params["wa"], x) + params["ba"][None]
    b = jnp.einsum("oc,bcn->bon", params["wb"], x) + params["bb"][None]
    m = jnp.einsum("oc,bcn->bon", params["wm"], x)
    m = params["gamma"][None] * (m - params["mean"][None]) \
        / jnp.sqrt(params["var"][None] + BN_EPS) + params["beta_bn"][None]
    att = jnp.einsum("bcn,bdn->bcd", a, b)
    att = jax.nn.softmax(att, axis=-1)
    f = jnp.einsum("bcd,bdn->bcn", att, m)
    return (x + params["beta"][0, 0] * f)[..., None]


def make_params(key, C):
    ks = jax.random.split(key, 5)
    scale = 1.0 / jnp.sqrt(C)
    return {
        "wa": jax.random.normal(ks[0], (C, C), jnp.float32) * scale,
        "ba": jax.random.normal(ks[1], (C, 1), jnp.float32) * 0.1,
        "wb": jax.random.normal(ks[2], (C, C), jnp.float32) * scale,
        "bb": jax.random.normal(ks[3], (C, 1), jnp.float32) * 0.1,
        "wm": jax.random.normal(ks[4], (C, C), jnp.float32) * scale,
        # BatchNorm2d at init (eval mode): gamma=1, beta=0, mean=0, var=1.
        # pt_utils.Conv2d with bn=True uses bias=False, so no mlp bias.
        "gamma": jnp.ones((C, 1), jnp.float32),
        "beta_bn": jnp.zeros((C, 1), jnp.float32),
        "mean": jnp.zeros((C, 1), jnp.float32),
        "var": jnp.ones((C, 1), jnp.float32),
        # self.beta initialized to 0.0 in PyTorch; use 0.5 so the attention
        # branch actually contributes in this synthetic test.
        "beta": jnp.full((1, 1), 0.5, jnp.float32),
    }


if __name__ == "__main__":
    B, C, N = 2, 32, 128
    key = jax.random.PRNGKey(0)
    kx, kp = jax.random.split(key)
    feature = jax.random.normal(kx, (B, C, N, 1), jnp.float32)
    params = make_params(kp, C)

    out = jax.block_until_ready(gfa_forward(feature, params))
    ref = gfa_reference(feature, params)
    assert out.shape == feature.shape
    err = float(jnp.max(jnp.abs(out - ref)))
    assert jnp.allclose(out, ref, atol=1e-3, rtol=1e-3), err
    print("KERNEL_OK")
</pallas_src>

<mosaic_0001>
module attributes {stable_mosaic.version = 11 : i64} {
  func.func @gfa_kernel(%arg0: i32, %arg1: memref<1x32x128xf32, #tpu.memory_space<vmem>>, %arg2: memref<96x32xf32, #tpu.memory_space<vmem>>, %arg3: memref<96x1xf32, #tpu.memory_space<vmem>>, %arg4: memref<1x32x128xf32, #tpu.memory_space<vmem>>) attributes {dimension_semantics = [#tpu.dimension_semantics<parallel>], iteration_bounds = array<i64: 2>, scalar_prefetch = 0 : i64, scratch_operands = 0 : i64, tpu.core_type = #tpu.core_type<tc>, window_params = [{transform_indices = @transform_0, window_bounds = array<i64: 1, 32, 128>}, {pipeline_mode = #tpu.pipeline_mode<synchronous>, transform_indices = @transform_1, window_bounds = array<i64: 96, 32>}, {pipeline_mode = #tpu.pipeline_mode<synchronous>, transform_indices = @transform_2, window_bounds = array<i64: 96, 1>}, {transform_indices = @transform_3, window_bounds = array<i64: 1, 32, 128>}]} {
    %c0 = arith.constant 0 : index
    %c0_0 = arith.constant 0 : index
    %0 = vector.load %arg2[%c0, %c0_0] : memref<96x32xf32, #tpu.memory_space<vmem>>, vector<96x32xf32>
    %c0_1 = arith.constant 0 : index
    %c0_2 = arith.constant 0 : index
    %1 = vector.load %arg3[%c0_1, %c0_2] : memref<96x1xf32, #tpu.memory_space<vmem>>, vector<96x1xf32>
    %c0_3 = arith.constant 0 : index
    %c0_4 = arith.constant 0 : index
    %c0_5 = arith.constant 0 : index
    %2 = vector.load %arg1[%c0_3, %c0_4, %c0_5] : memref<1x32x128xf32, #tpu.memory_space<vmem>>, vector<1x32x128xf32>
    %3 = vector.shape_cast %2 : vector<1x32x128xf32> to vector<32x128xf32>
    %cst = arith.constant dense<0.000000e+00> : vector<96x128xf32>
    %4 = tpu.matmul %0, %3, %cst {dimension_numbers = #tpu.dot_dimension_numbers<[1], [0], [0], [1], [0, 0, 1, 1], [], []>} : vector<96x32xf32>, vector<32x128xf32>, vector<96x128xf32> -> vector<96x128xf32>
    %5 = vector.broadcast %1 : vector<96x1xf32> to vector<96x128xf32>
    %6 = arith.addf %4, %5 : vector<96x128xf32>
    %7 = vector.extract_strided_slice %6 {offsets = [0, 0], sizes = [32, 128], strides = [1, 1]} : vector<96x128xf32> to vector<32x128xf32>
    %8 = vector.extract_strided_slice %6 {offsets = [32, 0], sizes = [32, 128], strides = [1, 1]} : vector<96x128xf32> to vector<32x128xf32>
    %9 = vector.extract_strided_slice %6 {offsets = [64, 0], sizes = [32, 128], strides = [1, 1]} : vector<96x128xf32> to vector<32x128xf32>
    %cst_6 = arith.constant dense<0.000000e+00> : vector<32x32xf32>
    %10 = tpu.matmul %7, %8, %cst_6 {dimension_numbers = #tpu.dot_dimension_numbers<[1], [1], [0], [0], [0, 0, 1, 0], [], []>} : vector<32x128xf32>, vector<32x128xf32>, vector<32x32xf32> -> vector<32x32xf32>
    %cst_7 = arith.constant dense<0xFF800000> : vector<32xf32>
    %11 = vector.multi_reduction <maximumf>, %10, %cst_7 [1] : vector<32x32xf32> to vector<32xf32>
    %12 = vector.shape_cast %11 : vector<32xf32> to vector<32x1xf32>
    %13 = vector.broadcast %12 : vector<32x1xf32> to vector<32x32xf32>
    %14 = arith.subf %10, %13 : vector<32x32xf32>
    %15 = math.exp %14 : vector<32x32xf32>
    %cst_8 = arith.constant dense<0.000000e+00> : vector<32xf32>
    %16 = vector.multi_reduction <add>, %15, %cst_8 [1] : vector<32x32xf32> to vector<32xf32>
    %17 = vector.shape_cast %16 : vector<32xf32> to vector<32x1xf32>
    %18 = vector.broadcast %17 : vector<32x1xf32> to vector<32x32xf32>
    %19 = arith.divf %15, %18 : vector<32x32xf32>
    %cst_9 = arith.constant dense<0.000000e+00> : vector<32x128xf32>
    %20 = tpu.matmul %19, %9, %cst_9 {dimension_numbers = #tpu.dot_dimension_numbers<[1], [0], [0], [1], [0, 0, 1, 1], [], []>} : vector<32x32xf32>, vector<32x128xf32>, vector<32x128xf32> -> vector<32x128xf32>
    %21 = arith.addf %3, %20 : vector<32x128xf32>
    %c0_10 = arith.constant 0 : index
    %c0_11 = arith.constant 0 : index
    %c0_12 = arith.constant 0 : index
    %22 = vector.load %arg4[%c0_10, %c0_11, %c0_12] : memref<1x32x128xf32, #tpu.memory_space<vmem>>, vector<1x32x128xf32>
    %23 = vector.shape_cast %22 : vector<1x32x128xf32> to vector<32x128xf32>
    %24 = vector.shape_cast %21 : vector<32x128xf32> to vector<1x32x128xf32>
    tpu.vector_store %arg4[%c0_10, %c0_11, %c0_12], %24 {strides = array<i32>} : memref<1x32x128xf32, #tpu.memory_space<vmem>>, vector<1x32x128xf32>,
    return
  }
  func.func @transform_0(%arg0: i32) -> (i32, i32, i32) {
    %c0_i32 = arith.constant 0 : i32
    %c0_i32_0 = arith.constant 0 : i32
    %c0_i32_1 = arith.constant 0 : i32
    return %arg0, %c0_i32, %c0_i32_0 : i32, i32, i32
  }
  func.func @transform_1(%arg0: i32) -> (i32, i32) {
    %c0_i32 = arith.constant 0 : i32
    %c0_i32_0 = arith.constant 0 : i32
    %c0_i32_1 = arith.constant 0 : i32
    return %c0_i32, %c0_i32_0 : i32, i32
  }
  func.func @transform_2(%arg0: i32) -> (i32, i32) {
    %c0_i32 = arith.constant 0 : i32
    %c0_i32_0 = arith.constant 0 : i32
    %c0_i32_1 = arith.constant 0 : i32
    return %c0_i32, %c0_i32_0 : i32, i32
  }
  func.func @transform_3(%arg0: i32) -> (i32, i32, i32) {
    %c0_i32 = arith.constant 0 : i32
    %c0_i32_0 = arith.constant 0 : i32
    %c0_i32_1 = arith.constant 0 : i32
    return %arg0, %c0_i32, %c0_i32_0 : i32, i32, i32
  }
}

</mosaic_0001>

<bundles_post_ra>
// kernel: tpu_custom_call.1
= control target key start
LH: loop header
LB: loop body
LE: loop exit
PB: predicated region body
PF: predicated region fallthrough
CT: control target
= control target key end

     0   :  { %8 = vsyncpa [#allocation3], 0  ;;  %s1232_s0 = inlined_call_operand.vmem [shape: f32[2,32,128], index: 0, kind: input, shape index: {}]   ;;  %s1233_s1 = inlined_call_operand.vmem [shape: f32[96,32], index: 1, kind: input, shape index: {}]   ;;  %s1234_s2 = inlined_call_operand.vmem [shape: f32[96,1], index: 2, kind: input, shape index: {}]   ;;  %s1235_s3 = inlined_call_operand.hbm [shape: f32[2,32,128], index: 3, kind: output, shape index: {}]  }
   0x1   :  { %10 = vsyncpa [#allocation3 + $0x1], 0  ;;  %s1017_s12 = smov 0   ;;  %s1019_s13 = smov 0  }
   0x2   :  { %s1021_s14 = smov 0   ;;  %s1023_s15 = smov 0  }
   0x3 LB: > { %s1038_s16 = sadd.s32 4294967295, %s991_s15   ;;  %s729_s17 = sadd.s32 4294967294, %s991_s15   ;;  %s991_s15 = sphi %s1023_s15, %s1241_s15   ;;  %s987_s14 = sphi %s1021_s14, %s1240_s14   ;;  %s983_s13 = sphi %s1019_s13, %s1239_s13   ;;  %s979_s12 = sphi %s1017_s12, %s1238_s12  }
   0x4   : > { %s1042_s18 = sadd.s32 1, %s991_s15   ;;  %s91_s19 = sadd.s32 1, %s987_s14 }
   0x5   : > { %s88_s20 = ssub.s32 %s991_s15, %s1042_s18  ;;  %p101_p0 = scmp.ne.s32.totalorder %s987_s14, %s983_s13 }
   0x6   : > { %p89_p1 = scmp.eq.s32.totalorder %s88_s20, 0  ;;  %p102_p2 = scmp.eq.s32.totalorder %s1038_s16, 1 }
   0x7   : > { %p107_p3 = scmp.ne.s32.totalorder %s983_s13, %s979_s12  ;;  %p108_p4 = scmp.eq.s32.totalorder %s729_s17, 1 }
   0x8   : > { %s1053_s21 = scalar_select %p89_p1, %s987_s14, %s91_s19  }
   0x9   : > { %p1055_p5 = por %p102_p2, %p101_p0  ;;  %p1059_p6 = por %p108_p4, %p107_p3 }
   0xa   : > { %p732_p7 = scmp.ge.s32.totalorder %s991_s15, 1  ;;  %p140_p8 = scmp.lt.s32.totalorder %s991_s15, 3 }
   0xc   : > { %p141_p9 = pnand %p732_p7, %p140_p8 }
   0xd   : > { %p164_p10 = scmp.lt.s32.totalorder (!%p141_p9), %s1038_s16, 1  ;;  %v169_v0 = vld [vmem:[%s1233_s1] sm:$0xff] (!%p141_p9)  ;;  %vm257_vm0 = vcmask (!%p141_p9), 261120   ;;  %v993_v1 = vmov (!%p141_p9), 0   ;;  %v187_v2 = vld [vmem:[%s1234_s2 + $0x30] sm:$0xff] (!%p141_p9)  ;;  %v188_v4 = vld [vmem:[%s1234_s2 + $0x38] sm:$0xff] (!%p141_p9) }
   0xe   : > { %144 = sbr.rel (%p141_p9) target bundleno = 1090 (0x442), region = 32  ;;  %799 = vmatprep.mubr.msk.f32.mxu0 (!%p141_p9), %vm257_vm0, %v169_v0  ;;  %912 = vset.pattern.permute.xlu1 (!%p141_p9), %v993_v1  ;;  %v185_v3 = vld [vmem:[%s1234_s2 + $0x20] sm:$0xff] (!%p141_p9)  ;;  %v186_v5 = vld [vmem:[%s1234_s2 + $0x28] sm:$0xff] (!%p141_p9)  ;;  %v184_v14 = vld [vmem:[%s1234_s2 + $0x18] sm:$0xff] (!%p141_p9)  ;;  %s161_s20 = sand.u32 (!%p141_p9), 1, %s983_s13  }
   0xf   : > { %911 = vset.pattern.permute.xlu0 (!%p141_p9), %v993_v1  ;;  %229 = vperm.xlu1 (!%p141_p9), %912, %v187_v2   ;;  %v182_v12 = vld [vmem:[%s1234_s2 + $0x8] sm:$0xff] (!%p141_p9)  ;;  %v181_v13 = vld [vmem:[%s1234_s2] sm:$0xff] (!%p141_p9)  ;;  %v183_v15 = vld [vmem:[%s1234_s2 + $0x10] sm:$0xff] (!%p141_p9)  ;;  %s733_s24 = sshll.u32 (!%p141_p9), %s161_s20, 5  ;;  %s758_s27 = sshll.u32 (!%p141_p9), %s1038_s16, 9 }
  0x10   : > { %219 = vperm.xlu0 (!%p141_p9), %911, %v185_v3   ;;  %v170_v16 = vld [vmem:[%s1233_s1 + $0x8] sm:$0xff] (!%p141_p9)  ;;  %v171_v17 = vld [vmem:[%s1233_s1 + $0x10] sm:$0xff] (!%p141_p9)  ;;  %v172_v18 = vld [vmem:[%s1233_s1 + $0x18] sm:$0xff] (!%p141_p9)  ;;  %s163_s25 = scalar_lea.vmem (!%p141_p9), [#allocation2], %s733_s24  ;;  %s1188_s30 = scalar_lea.hbm (!%p141_p9), %s1235_s3, %s758_s27 }
  0x11   : > { %v173_v19 = vld [vmem:[%s1233_s1 + $0x20] sm:$0xff] (!%p141_p9)  ;;  %v174_v20 = vld [vmem:[%s1233_s1 + $0x28] sm:$0xff] (!%p141_p9)  ;;  %v175_v21 = vld [vmem:[%s1233_s1 + $0x30] sm:$0xff] (!%p141_p9)  ;;  %s994_s5 = smov (!%p141_p9), [#allocation2]  }
  0x12   : > { %v176_v22 = vld [vmem:[%s1233_s1 + $0x38] sm:$0xff] (!%p141_p9)  ;;  %v177_v23 = vld [vmem:[%s1233_s1 + $0x40] sm:$0xff] (!%p141_p9)  ;;  %v178_v24 = vld [vmem:[%s1233_s1 + $0x48] sm:$0xff] (!%p141_p9)  ;;  %s933_s6 = sshll.u32 (!%p141_p9), %s994_s5, 4  ;;  %s934_s6 = int_to_ptr.vmem [resolvable:$false] %s933_s6 }
  0x13   : > { %234 = vperm.xlu1 (!%p141_p9), %912, %v188_v4   ;;  %v179_v51 = vld [vmem:[%s1233_s1 + $0x50] sm:$0xff] (!%p141_p9)  ;;  %v180_v52 = vld [vmem:[%s1233_s1 + $0x58] sm:$0xff] (!%p141_p9)  ;;  %v189_v61 = vld [vmem:[%s1234_s2 + $0x40] sm:$0xff] (!%p141_p9)  ;;  %s935_s7 = scalar_lea.vmem (!%p141_p9), %s934_s6, 1024 }
  0x14   : > { %224 = vperm.xlu0 (!%p141_p9), %911, %v186_v5  }
  0x15   : > { %s165_s26 = scalar_select %p164_p10, %s1038_s16, 1 }
  0x16   : > { %s1191_s16 = scalar_lea.sflag [#allocation3], %s161_s20 }
  0x17   : > { %s757_s4 = sshll.u32 %s165_s26, 5  ;;  %204 = vperm.xlu1 %912, %v182_v12   ;;  %s667_s26 = sshll.u32 %s163_s25, 4  ;;  %s1182_s26 = int_to_ptr.vmem [resolvable:$true] %s667_s26 }
  0x18   : > { %s168_s9 = scalar_lea.vmem %s1232_s0, %s757_s4  ;;  %199 = vperm.xlu0 %911, %v181_v13   ;;  %s929_s4 = scalar_lea.vmem %s1182_s26, 512 }
  0x19   : > { %v1086_v6 = vld [vmem:[%s168_s9] sm:$0xff]  ;;  %v1088_v7 = vld [vmem:[%s168_s9 + $0x8] sm:$0xff]  ;;  %v1090_v8 = vld [vmem:[%s168_s9 + $0x10] sm:$0xff]  ;;  %p930_p11 = scmp.ne.s32.totalorder %s1182_s26, %s929_s4  ;;  %p936_p0 = scmp.lt.s32.totalorder %s1182_s26, %s934_s6 }
  0x1a   : > { %v845_v9 = vpack.c.bf16 %v1088_v7, %v1086_v6  ;;  %v1094_v10 = vld [vmem:[%s168_s9 + $0x18] sm:$0xff]  ;;  %p937_p1 = scmp.lt.s32.totalorder %s935_s7, %s929_s4 }
  0x1b   : > { %v849_v11 = vpack.c.bf16 %v1094_v10, %v1090_v8  ;;  %214 = vperm.xlu1 %912, %v184_v14   ;;  %p931_p12 = pnand %p930_p11, %p1055_p5 }
  0x1c   : > { %846 = vmatprep.subr.bf16.mxu0 %v845_v9  ;;  %209 = vperm.xlu0 %911, %v183_v15   ;;  %p938_p2 = por %p937_p1, %p936_p0 }
  0x1d   : > { %848 = vmatpush3.bf16.msra.mxu0 %v845_v9  ;;  %p932_p13 = pneg %p931_p12 }
  0x1e   : > { %850 = vmatprep.subr.bf16.mxu0 %v849_v11 }
  0x1f   : > { %p939_p3 = pnand %p938_p2, %p932_p13 }
  0x21   : > { %852 = vmatpush3.bf16.msra.mxu0 %v849_v11 }
  0x24   : > { %800 = vmatmul.mubr.msk.f32.vlgmr.msra.gmra.mrb[0].mxu0 %vm257_vm0, %v170_v16 }
  0x25   : > { %802 = vmatprep.mubr.msk.f32.mxu0 %vm257_vm0, %v171_v17 }
  0x28   : > { %803 = vmatmul.mubr.msk.f32.gmra.mrb[2].mxu0 %vm257_vm0, %v172_v18 }
  0x29   : > { %805 = vmatprep.mubr.msk.f32.mxu0 %vm257_vm0, %v173_v19 }
  0x2c   : > { %806 = vmatmul.mubr.msk.f32.gmra.mrb[4].mxu0 %vm257_vm0, %v174_v20  ;;  %v191_v20 = vld [vmem:[%s1234_s2 + $0x50] sm:$0xff] }
  0x2d   : > { %808 = vmatprep.mubr.msk.f32.mxu0 %vm257_vm0, %v175_v21 }
  0x30   : > { %809 = vmatmul.mubr.msk.f32.gmra.mrb[6].mxu0 %vm257_vm0, %v176_v22 }
  0x31   : > { %811 = vmatprep.mubr.msk.f32.mxu0 %vm257_vm0, %v177_v23  ;;  %v190_v23 = vld [vmem:[%s1234_s2 + $0x48] sm:$0xff] }
  0x34   : > { %812 = vmatmul.mubr.msk.f32.gmra.mrb[8].mxu0 %vm257_vm0, %v178_v24 }
  0x35   : > { %814 = vmatprep.mubr.msk.f32.mxu0 %vm257_vm0, %v179_v51 }
  0x38   : > { %815 = vmatmul.mubr.msk.f32.gmra.mrb[10].mxu0 %vm257_vm0, %v180_v52 }
  0x8e   : > { %v230_v33 = vpop.permute.xlu1 %229 }
  0x8f   : > { %v220_v25 = vpop.permute.xlu0 %219 }
  0x92   : > { %v235_v38 = vpop.permute.xlu1 %234 }
  0x93   : > { %v225_v26 = vpop.permute.xlu0 %224 }
  0x96   : > { %v205_v45 = vpop.permute.xlu1 %204 }
  0x97   : > { %v200_v27 = vpop.permute.xlu0 %199 }
  0x9a   : > { %v215_v48 = vpop.permute.xlu1 %214 }
  0x9b   : > { %v210_v46 = vpop.permute.xlu0 %209 }
  0xf7   : > { %v801_v28 = vpop.f32.mrb[0].mxu0 }
  0xf8   : > { %v360_v29 = vpop.f32.mrb[1].mxu0  ;;  %v366_v47 = vadd.f32 %v801_v28, %v205_v45  ;;  %v192_v28 = vld [vmem:[%s1234_s2 + $0x58] sm:$0xff] }
  0xf9   : > { %v361_v30 = vadd.f32 %v360_v29, %v200_v27 }
  0xfb   : > { %v804_v31 = vpop.f32.mrb[2].mxu0  ;;  %825 = vmatprep.mubr.f32.mxu1 %v361_v30 }
  0xfc   : > { %v370_v32 = vpop.f32.mrb[3].mxu0  ;;  %v376_v50 = vadd.f32 %v804_v31, %v215_v48 }
  0xfd   : > { %v371_v49 = vadd.f32 %v370_v32, %v210_v46 }
  0xff   : > { %v807_v34 = vpop.f32.mrb[4].mxu0 }
 0x100   : > { %v386_v35 = vadd.f32 %v807_v34, %v225_v26  ;;  %v380_v36 = vpop.f32.mrb[5].mxu0 }
 0x101   : > { %v381_v37 = vadd.f32 %v380_v36, %v220_v25 }
 0x103   : > { %v810_v39 = vpop.f32.mrb[6].mxu0  ;;  %v853_v40 = vpack.c.bf16 %v386_v35, %v381_v37 }
 0x104   : > { %v396_v41 = vadd.f32 %v810_v39, %v235_v38  ;;  %v390_v42 = vpop.f32.mrb[7].mxu0 }
 0x105   : > { %v391_v43 = vadd.f32 %v390_v42, %v230_v33  ;;  %854 = vmatprep.subr.bf16.mxu1 %v853_v40 }
 0x106   : > { %856 = vmatpush3.bf16.xpose.msra.mxu1 %v853_v40 }
 0x107   : > { %v857_v44 = vpack.c.bf16 %v396_v41, %v391_v43  ;;  %v813_v62 = vpop.f32.mrb[8].mxu0 }
 0x108   : > { %v400_v63 = vpop.f32.mrb[9].mxu0 }
 0x109   : > { %858 = vmatprep.subr.bf16.mxu1 %v857_v44 }
 0x10b   : > { %v816_v21 = vpop.f32.mrb[10].mxu0 }
 0x10c   : > { %v410_v22 = vpop.f32.mrb[11].mxu0 }
 0x10e   : > { %860 = vmatpush3.bf16.xpose.msra.mxu1 %v857_v44 }
 0x115   : > { %826 = vmatmul.mubr.f32.vlgmr.msra.gmra.mrb[0].mxu1 %v366_v47 }
 0x116   : > { %828 = vmatprep.mubr.f32.mxu1 %v371_v49 }
 0x119   : > { %829 = vmatmul.mubr.f32.gmra.mrb[2].mxu1 %v376_v50 }
 0x1e8   : > { %v827_v53 = vpop.f32.mrb[0].mxu1 }
 0x1e9   : > { %v485_v54 = vpop.f32.mrb[1].mxu1  ;;  %v507_v55 = vsel %vm257_vm0, %v827_v53, -inf }
 0x1ea   : > { %508 = vmax.xlane.f32.xlu1 %v507_v55  ;;  %v504_v56 = vsel %vm257_vm0, %v485_v54, -inf }
 0x1eb   : > { %505 = vmax.xlane.f32.xlu0 %v504_v56 }
 0x1ec   : > { %v830_v57 = vpop.f32.mrb[2].mxu1 }
 0x1ed   : > { %v495_v58 = vpop.f32.mrb[3].mxu1  ;;  %v513_v60 = vsel %vm257_vm0, %v830_v57, -inf }
 0x1ee   : > { %v510_v59 = vsel %vm257_vm0, %v495_v58, -inf }
 0x1ef   : > { %511 = vmax.xlane.f32.xlu0 %v510_v59 }
 0x1f3   : > { %514 = vmax.xlane.f32.xlu0 %v513_v60 }
 0x1fb   : > { %239 = vperm.xlu1 %912, %v189_v61  }
 0x277   : > { %v509_v0 = vpop.xlane.xlu1 %508 }
 0x278   : > { %v517_v1 = vsub.f32 %v827_v53, %v509_v0  ;;  %v506_v2 = vpop.xlane.xlu0 %505 }
 0x279   : > { %v516_v3 = vsub.f32 %v485_v54, %v506_v2 }
 0x27a   : > { %v522_v4 = vmul.f32 1.442695, %v517_v1 }
 0x27b   : > { %v520_v5 = vmul.f32 1.442695, %v516_v3  ;;  %v240_v29 = vpop.permute.xlu1 %239 }
 0x27c   : > { %913 = vpow2.f32 %v522_v4  ;;  %v512_v9 = vpop.xlane.xlu0 %511  ;;  %v401_v36 = vadd.f32 %v400_v63, %v240_v29 }
 0x27d   : > { %915 = vpow2.f32 %v520_v5  ;;  %v518_v24 = vsub.f32 %v495_v58, %v512_v9 }
 0x27f   : > { %v524_v25 = vmul.f32 1.442695, %v518_v24 }
 0x280   : > { %v515_v11 = vpop.xlane.xlu0 %514 }
 0x281   : > { %v519_v12 = vsub.f32 %v830_v57, %v515_v11 }
 0x283   : > { %v526_v13 = vmul.f32 1.442695, %v519_v12 }
 0x285   : > { %917 = vpow2.f32 %v526_v13 }
 0x286   : > { %v914_v14 = vpop.eup %913  ;;  %919 = vpow2.f32 %v524_v25 }
 0x287   : > { %v916_v15 = vpop.eup %915  ;;  %v531_v16 = vsel %vm257_vm0, %v914_v14, 0.0 }
 0x288   : > { %532 = vadd.xlane.f32.xlu0 %v531_v16  ;;  %v528_v17 = vsel %vm257_vm0, %v916_v15, 0.0 }
 0x289   : > { %529 = vadd.xlane.f32.xlu1 %v528_v17 }
 0x28f   : > { %v918_v18 = vpop.eup %917 }
 0x290   : > { %v537_v19 = vsel %vm257_vm0, %v918_v18, 0.0  ;;  %v920_v26 = vpop.eup %919 }
 0x291   : > { %538 = vadd.xlane.f32.xlu0 %v537_v19  ;;  %v534_v27 = vsel %vm257_vm0, %v920_v26, 0.0 }
 0x29a   : > { %249 = vperm.xlu1 %912, %v191_v20  }
 0x2a7   : > { %244 = vperm.xlu0 %911, %v190_v23  }
 0x2be   : > { %535 = vadd.xlane.f32.xlu1 %v534_v27 }
 0x2cf   : > { %254 = vperm.xlu1 %912, %v192_v28  }
 0x315   : > { %v533_v31 = vpop.xlane.xlu0 %532 }
 0x316   : > { %v530_v30 = vpop.xlane.xlu1 %529 }
 0x317   : > { %921 = vrcp.f32 %v530_v30 }
 0x318   : > { %923 = vrcp.f32 %v533_v31 }
 0x31a   : > { %v250_v39 = vpop.permute.xlu1 %249 }
 0x31b   : > { %v411_v42 = vadd.f32 %v410_v22, %v250_v39 }
 0x31e   : > { %v539_v33 = vpop.xlane.xlu0 %538 }
 0x321   : > { %v922_v32 = vpop.eup %921 }
 0x322   : > { %v541_v34 = vmul.f32 %v922_v32, %v916_v15  ;;  %v924_v45 = vpop.eup %923 }
 0x323   : > { %v543_v47 = vmul.f32 %v924_v45, %v914_v14 }
 0x324   : > { %839 = vmatprep.mubr.msk.f32.mxu1 %vm257_vm0, %v541_v34 }
 0x326   : > { %v245_v35 = vpop.permute.xlu0 %244 }
 0x327   : > { %v406_v37 = vadd.f32 %v813_v62, %v245_v35 }
 0x329   : > { %v861_v38 = vpack.c.bf16 %v406_v37, %v401_v36 }
 0x32b   : > { %862 = vmatprep.subr.bf16.mxu1 %v861_v38 }
 0x32c   : > { %864 = vmatpush3.bf16.msra.mxu1 %v861_v38 }
 0x34b   : > { %v536_v40 = vpop.xlane.xlu1 %535 }
 0x34c   : > { %925 = vrcp.f32 %v536_v40 }
 0x34d   : > { %927 = vrcp.f32 %v539_v33 }
 0x34f   : > { %v255_v41 = vpop.permute.xlu1 %254 }
 0x350   : > { %v416_v43 = vadd.f32 %v816_v21, %v255_v41 }
 0x352   : > { %v865_v44 = vpack.c.bf16 %v416_v43, %v411_v42 }
 0x354   : > { %866 = vmatprep.subr.bf16.mxu1 %v865_v44 }
 0x355   : > { %868 = vmatpush3.bf16.msra.mxu1 %v865_v44 }
 0x356   : > { %v926_v46 = vpop.eup %925 }
 0x357   : > { %v928_v48 = vpop.eup %927  ;;  %v545_v49 = vmul.f32 %v926_v46, %v920_v26 }
 0x358   : > { %840 = vmatmul.mubr.msk.f32.vlgmr.msra.gmra.mrb[4].mxu1 %vm257_vm0, %v543_v47  ;;  %v547_v50 = vmul.f32 %v928_v48, %v918_v18 }
 0x359   : > { %842 = vmatprep.mubr.msk.f32.mxu1 %vm257_vm0, %v545_v49 }
 0x35c   : > { %843 = vmatmul.mubr.msk.f32.gmra.mrb[6].mxu1 %vm257_vm0, %v547_v50 }
 0x42b   : > { %v841_v51 = vpop.f32.mrb[4].mxu1 }
 0x42c   : > { %v646_v52 = vadd.f32 %v841_v51, %v1088_v7  ;;  %v626_v53 = vpop.f32.mrb[5].mxu1 }
 0x42d   : > { %v645_v54 = vadd.f32 %v626_v53, %v1086_v6 }
 0x42e   : > { %650 = vst [vmem:[%s163_s25 + $0x8] sm:$0xff] %v646_v52 }
 0x42f   : > { %649 = vst [vmem:[%s163_s25] sm:$0xff] %v645_v54  ;;  %v844_v55 = vpop.f32.mrb[6].mxu1 }
 0x430   : > { %v648_v56 = vadd.f32 %v844_v55, %v1094_v10  ;;  %v636_v57 = vpop.f32.mrb[7].mxu1 }
 0x431   : > { %v647_v7 = vadd.f32 %v636_v57, %v1090_v8 }
 0x432   : > { %652 = vst [vmem:[%s163_s25 + $0x18] sm:$0xff] %v648_v56 }
 0x433   : > { %651 = vst [vmem:[%s163_s25 + $0x10] sm:$0xff] %v647_v7 }
 0x434   : > { %942 = shalt.err (!%p939_p3)
}
 0x435   : > { %s943_s8 = scalar_lea.hbm %s1188_s30, 512  ;;  %s947_s11 = scalar_lea.hbm %s1235_s3, 1024 }
 0x436   : > { %p944_p4 = scmp.ne.s32.totalorder %s1188_s30, %s943_s8  ;;  %p948_p9 = scmp.lt.u32.totalorder %s1188_s30, %s1235_s3 }
 0x437   : > { %p949_p10 = scmp.lt.u32.totalorder %s947_s11, %s943_s8  ;;  %p951_p12 = scmp.lt.u32.totalorder %s943_s8, %s1188_s30 }
 0x438   : > { %p945_p7 = pnand %p944_p4, %p1055_p5 }
 0x439   : > { %p950_p11 = por %p949_p10, %p948_p9 }
 0x43a   : > { %p946_p8 = pneg %p945_p7 }
 0x43b   : > { %p952_p13 = por %p951_p12, %p950_p11 }
 0x43d   : > { %p953_p0 = pnand %p952_p13, %p946_p8 }
 0x43f   : > { %956 = shalt.err (!%p953_p0)
}
 0x440   : > { %s995_s20 = smov 128   ;;  %s996_s24 = smov 8  }
 0x441   : > { %869 = dma.vmem_to_hbm [thread:$0]  (%p1055_p5), %s1182_s26, 512, %s1188_s30, %s1191_s16, %s995_s20, %s995_s20, %s996_s24  }
 0x442 PF: > { %p875_p1 = scmp.ge.s32.totalorder %s991_s15, 2  ;;  %s682_s25 = sand.u32 1, %s979_s12  }
 0x443   : > { %s683_s27 = scalar_lea.sflag [#allocation3], %s682_s25 }
 0x444   : > { %p872_p2 = pnand %p875_p1, %p1059_p6 }
 0x446   : > { %974 = dma.done.wait (!%p872_p2), %s683_s27, 512  }
 0x447   : > { %976 = vsyncadd (!%p872_p2), %s683_s27, 4294966784  ;;  %p13_p3 = scmp.ge.s32.totalorder %s1042_s18, 4   ;;  %s1238_s12 = smov %s983_s13 }
 0x448   : > { %s1239_s13 = smov %s987_s14  ;;  %s1240_s14 = smov %s1053_s21 }
 0x449   : > { %s1241_s15 = smov %s1042_s18  ;;  %15 = sbr.rel (!%p13_p3) target bundleno = 3 (0x3), region = 67 }
 0x450   :  { %688 = vsyncpa [#allocation3], 1 }
 0x451   :  { %690 = vsyncpa [#allocation3 + $0x1], 1 }

</bundles_post_ra>
